<compile_context>
chip_gen: v6e
topology: v6e:2x2x1
jax: 0.10.0
libtpu: 0.0.40
codegen_flags: <defaults>
</compile_context>

<pallas_src>
from functools import partial

import jax
import jax.numpy as jnp
from jax.experimental import pallas as pl
from jax.experimental.pallas import tpu as pltpu

LANES = 128
BATCH_TILE = 128


def _round8(n):
    return (n + 7) & ~7


# ----------------------------------------------------------------------------
# Scalar (single-sample) kernel: VPU multiply + XLU reduce, no MXU.
# Activation parity: feat col (8,1) -> h1 row (1,128) -> h2 col (n2,1)
#                    -> h3 row (1,128) -> scalar (1,1).
# ----------------------------------------------------------------------------
def three_layer_scalar_kernel(x_ref, slab_ref, o_ref, *, n2,
                              o_w1, o_b1, o_w2, o_b2, o_w3, o_b3, o_w4, o_b4):
    x00 = x_ref[0]
    x01 = x_ref[1]

    # Feature column on sublanes 0..3; sublanes 4..7 explicitly zeroed so
    # correctness never depends on slab padding alone.
    sub = jax.lax.broadcasted_iota(jnp.int32, (8, 1), 0)
    xv = jnp.where(sub < 2, x00, x01)
    trig = jnp.where(sub % 2 == 0, jnp.sin(xv), jnp.cos(xv))
    feat = jnp.where(sub < 4, trig, 0.0)                          # (8, 1)

    # Layer 1: sublane contraction -> lane-dense row.
    w1t = slab_ref[o_w1:o_w1 + 8, :]                              # (8, 128) [W1^T|0]
    b1r = slab_ref[o_b1:o_b1 + 1, :]                              # (1, 128)
    h1 = jnp.tanh(jnp.sum(feat * w1t, axis=0, keepdims=True) + b1r)   # (1, 128)

    # Layer 2: lane contraction -> column.
    w2 = slab_ref[o_w2:o_w2 + n2, :]                              # (n2, 128) = W2
    b2c = slab_ref[o_b2:o_b2 + n2, 0:1]                           # (n2, 1)
    h2 = jnp.tanh(jnp.sum(h1 * w2, axis=1, keepdims=True) + b2c)       # (n2, 1)

    # Layer 3: sublane contraction -> lane-dense row.
    w3t = slab_ref[o_w3:o_w3 + n2, :]                             # (n2, 128) = W3^T
    b3r = slab_ref[o_b3:o_b3 + 1, :]                              # (1, 128)
    h3 = jnp.tanh(jnp.sum(h2 * w3t, axis=0, keepdims=True) + b3r)      # (1, 128)

    # Layer 4: lane contraction -> scalar.
    w4r = slab_ref[o_w4:o_w4 + 1, :]                              # (1, 128)
    b4 = slab_ref[o_b4:o_b4 + 1, 0:1]                             # (1, 1)
    o_ref[...] = jnp.sum(h3 * w4r, axis=1, keepdims=True) + b4         # (1, 1)


# ----------------------------------------------------------------------------
# Batched kernel: grid over 128-row batch tiles; MXU for the wide contractions.
# ----------------------------------------------------------------------------
def three_layer_batched_kernel(x_ref, w1_ref, b1_ref, w2_ref, b2_ref,
                               w3_ref, b3_ref, w4_ref, b4_ref, o_ref):
    x = x_ref[...]                                                # (TB, 2)
    x0 = x[:, 0:1]
    x1 = x[:, 1:2]

    # Layer 1 on the VPU: K=4 contraction as 4 broadcast FMAs (a 4-wide MXU
    # matmul would waste the array and add pipeline-fill latency).
    w1 = w1_ref[...]                                              # (4, n1) lane-dense
    pre1 = (jnp.sin(x0) * w1[0:1, :] + jnp.cos(x0) * w1[1:2, :]
            + jnp.sin(x1) * w1[2:3, :] + jnp.cos(x1) * w1[3:4, :]
            + b1_ref[...])
    h = jnp.tanh(pre1)                                            # (TB, n1)

    # Layers 2-3 on the MXU (>= 128 rows per step).
    h = jnp.tanh(jnp.dot(h, w2_ref[...],
                         preferred_element_type=jnp.float32) + b2_ref[...])
    h = jnp.tanh(jnp.dot(h, w3_ref[...],
                         preferred_element_type=jnp.float32) + b3_ref[...])

    # Layer 4 (n3 -> 1) as a VPU multiply + lane reduce (avoids an N=1 matmul).
    o_ref[...] = (jnp.sum(h * w4_ref[...], axis=1, keepdims=True)
                  + b4_ref[...])                                  # (TB, 1)


# ----------------------------------------------------------------------------
# Weight packing (one-time, host/XLA side).
# ----------------------------------------------------------------------------
def pack_params(params):
    """Pack all weights/biases into one (rows, 128) f32 slab for the scalar
    kernel. Every padded lane/row is exact zero."""
    w1, b1, w2, b2, w3, b3, w4, b4 = params
    n1, n2, n3 = w1.shape[0], w2.shape[0], w3.shape[0]
    assert w1.shape == (n1, 4) and b1.shape == (n1,)
    assert w2.shape == (n2, n1) and b2.shape == (n2,)
    assert w3.shape == (n3, n2) and b3.shape == (n3,)
    assert w4.shape == (1, n3) and b4.shape == (1,)
    assert max(n1, n2, n3) <= LANES, "hidden widths beyond 128 need lane tiling"

    o_w1 = 0                          # 8 rows : W1^T (4, n1) in rows 0..3
    o_b1 = o_w1 + 8                   # 1 row  : b1
    o_w2 = o_b1 + 8                   # n2 rows: W2 (n2, n1)
    o_b2 = o_w2 + _round8(n2)         # n2 rows: b2 column (lane 0)
    o_w3 = o_b2 + _round8(n2)         # n2 rows: W3^T (n2, n3)
    o_b3 = o_w3 + _round8(n2)         # 1 row  : b3
    o_w4 = o_b3 + 8                   # 1 row  : W4 (1, n3)
    o_b4 = o_w4 + 8                   # 1 row  : b4 (lane 0)
    rows = o_b4 + 8

    f32 = jnp.float32
    slab = jnp.zeros((rows, LANES), f32)
    slab = slab.at[o_w1:o_w1 + 4, :n1].set(w1.T.astype(f32))
    slab = slab.at[o_b1, :n1].set(b1.astype(f32))
    slab = slab.at[o_w2:o_w2 + n2, :n1].set(w2.astype(f32))
    slab = slab.at[o_b2:o_b2 + n2, 0].set(b2.astype(f32))
    slab = slab.at[o_w3:o_w3 + n2, :n3].set(w3.T.astype(f32))
    slab = slab.at[o_b3, :n3].set(b3.astype(f32))
    slab = slab.at[o_w4, :n3].set(w4.astype(f32)[0, :])
    slab = slab.at[o_b4, 0].set(b4.astype(f32)[0])

    koff = dict(n2=n2, o_w1=o_w1, o_b1=o_b1, o_w2=o_w2, o_b2=o_b2,
                o_w3=o_w3, o_b3=o_b3, o_w4=o_w4, o_b4=o_b4)
    return slab, koff


def pack_dense(params):
    """Lane-dense (in, out) weights + (1, out) biases for the batched/MXU path."""
    w1, b1, w2, b2, w3, b3, w4, b4 = [jnp.asarray(p, jnp.float32) for p in params]
    return (w1.T, b1.reshape(1, -1),
            w2.T, b2.reshape(1, -1),
            w3.T, b3.reshape(1, -1),
            w4.reshape(1, -1), b4.reshape(1, 1))


# ----------------------------------------------------------------------------
# Entry-point builder: weights captured once as device-resident constants,
# both wrappers jitted (no per-call weight upload / re-packing).
# ----------------------------------------------------------------------------
def make_three_layer(params, batch_tile=BATCH_TILE):
    slab, koff = pack_params(params)
    dense = pack_dense(params)

    scalar_call = pl.pallas_call(
        partial(three_layer_scalar_kernel, **koff),
        out_shape=jax.ShapeDtypeStruct((1, 1), jnp.float32),
        in_specs=[pl.BlockSpec(memory_space=pltpu.SMEM),   # x: flat (2,) scalars
                  pl.BlockSpec(memory_space=pltpu.VMEM)],  # packed weight slab
        out_specs=pl.BlockSpec(memory_space=pltpu.VMEM),
    )

    @jax.jit
    def forward(x):
        """Exact module semantics: uses x[0,0], x[0,1]; returns shape (1,)."""
        xs = x[0, :2].astype(jnp.float32)                  # (2,) -> SMEM
        return scalar_call(xs, slab).reshape(1)

    @jax.jit
    def forward_batched(xs):
        """Throughput path: one row of xs = one (x0, x1) sample -> (B, 1)."""
        xs2 = xs[:, :2].astype(jnp.float32)
        B = xs2.shape[0]
        Bp = ((B + batch_tile - 1) // batch_tile) * batch_tile
        xp = jnp.pad(xs2, ((0, Bp - B), (0, 0)))
        grid = (Bp // batch_tile,)
        weight_specs = [pl.BlockSpec(t.shape, lambda i: (0, 0)) for t in dense]
        out = pl.pallas_call(
            three_layer_batched_kernel,
            out_shape=jax.ShapeDtypeStruct((Bp, 1), jnp.float32),
            grid=grid,
            in_specs=[pl.BlockSpec((batch_tile, 2), lambda i: (i, 0))]
                     + weight_specs,
            out_specs=pl.BlockSpec((batch_tile, 1), lambda i: (i, 0)),
            compiler_params=pltpu.CompilerParams(
                dimension_semantics=("parallel",)),        # v7x: 2 TCs share the grid
        )(xp, *dense)
        return out[:B]

    return forward, forward_batched


# ----------------------------------------------------------------------------
# Init + pure-JAX references.
# ----------------------------------------------------------------------------
def init_params(key, nodes1, nodes2, nodes3):
    """Deterministic init mimicking nn.Linear (uniform +-1/sqrt(fan_in))."""
    dims = [(nodes1, 4), (nodes2, nodes1), (nodes3, nodes2), (1, nodes3)]
    params = []
    for (out_d, in_d) in dims:
        key, kw, kb = jax.random.split(key, 3)
        bound = 1.0 / jnp.sqrt(jnp.float32(in_d))
        w = jax.random.uniform(kw, (out_d, in_d), jnp.float32, -bound, bound)
        b = jax.random.uniform(kb, (out_d,), jnp.float32, -bound, bound)
        params += [w, b]
    return tuple(params)


def reference_forward(x, params):
    w1, b1, w2, b2, w3, b3, w4, b4 = params
    hi = jax.lax.Precision.HIGHEST
    f = jnp.array([jnp.sin(x[0, 0]), jnp.cos(x[0, 0]),
                   jnp.sin(x[0, 1]), jnp.cos(x[0, 1])], jnp.float32)
    h = jnp.tanh(jnp.dot(f, w1.T, precision=hi) + b1)
    h = jnp.tanh(jnp.dot(h, w2.T, precision=hi) + b2)
    h = jnp.tanh(jnp.dot(h, w3.T, precision=hi) + b3)
    return jnp.dot(h, w4.T, precision=hi) + b4


def reference_forward_batched(xs, params):
    w1, b1, w2, b2, w3, b3, w4, b4 = params
    hi = jax.lax.Precision.HIGHEST
    f = jnp.stack([jnp.sin(xs[:, 0]), jnp.cos(xs[:, 0]),
                   jnp.sin(xs[:, 1]), jnp.cos(xs[:, 1])], axis=1)
    h = jnp.tanh(jnp.dot(f, w1.T, precision=hi) + b1)
    h = jnp.tanh(jnp.dot(h, w2.T, precision=hi) + b2)
    h = jnp.tanh(jnp.dot(h, w3.T, precision=hi) + b3)
    return jnp.dot(h, w4.T, precision=hi) + b4


if __name__ == "__main__":
    nodes1, nodes2, nodes3 = 32, 32, 16

    key = jax.random.PRNGKey(0)
    kx, kb, kp = jax.random.split(key, 3)
    x = jax.random.normal(kx, (2, 2), jnp.float32)       # only x[0,0], x[0,1] used
    params = init_params(kp, nodes1, nodes2, nodes3)

    forward, forward_batched = make_three_layer(params)

    # Single-sample path (exact module semantics): VPU/XLU kernel, tight check.
    out = jax.block_until_ready(forward(x))
    ref = reference_forward(x, params)
    assert out.shape == (1,)
    assert jnp.allclose(out, ref, atol=5e-5, rtol=5e-5), (out, ref)

    # Batched path (amortizes dispatch/DMA over many samples): MXU kernel.
    xs = jax.random.normal(kb, (300, 2), jnp.float32)    # non-multiple of 128 -> pads
    outs = jax.block_until_ready(forward_batched(xs))
    refs = reference_forward_batched(xs, params)
    assert outs.shape == (300, 1)
    # Looser tolerance: covers MXU default-precision f32 pass decomposition;
    # a layout/packing bug would show errors orders of magnitude larger.
    max_err = jnp.max(jnp.abs(outs - refs))
    assert max_err < 3e-2, max_err

    print("KERNEL_OK")
</pallas_src>

<mosaic_0001>
module attributes {stable_mosaic.version = 11 : i64} {
  func.func @three_layer_scalar_kernel(%arg0: memref<2xf32, #tpu.memory_space<smem>>, %arg1: memref<136x128xf32, #tpu.memory_space<vmem>>, %arg2: memref<1x1xf32, #tpu.memory_space<vmem>>) attributes {dimension_semantics = [], scalar_prefetch = 0 : i64, scratch_operands = 0 : i64, tpu.core_type = #tpu.core_type<tc>} {
    %c0 = arith.constant 0 : index
    %0 = memref.load %arg0[%c0] : memref<2xf32, #tpu.memory_space<smem>>
    %c1 = arith.constant 1 : index
    %1 = memref.load %arg0[%c1] : memref<2xf32, #tpu.memory_space<smem>>
    %2 = tpu.iota {dimensions = array<i32: 0>} : vector<8x1xi32>
    %c2_i32 = arith.constant 2 : i32
    %3 = vector.broadcast %c2_i32 : i32 to vector<8x1xi32>
    %4 = arith.cmpi slt, %2, %3 : vector<8x1xi32>
    %5 = vector.broadcast %0 : f32 to vector<8x1xf32>
    %6 = vector.broadcast %1 : f32 to vector<8x1xf32>
    %7 = arith.select %4, %5, %6 : vector<8x1xi1>, vector<8x1xf32>
    %c2_i32_0 = arith.constant 2 : i32
    %c0_i32 = arith.constant 0 : i32
    %8 = arith.cmpi eq, %c2_i32_0, %c0_i32 : i32
    %c1_i32 = arith.constant 1 : i32
    %9 = arith.select %8, %c1_i32, %c2_i32_0 : i32
    %10 = vector.broadcast %9 : i32 to vector<8x1xi32>
    %11 = arith.remsi %2, %10 : vector<8x1xi32>
    %c0_i32_1 = arith.constant 0 : i32
    %12 = vector.broadcast %c0_i32_1 : i32 to vector<8x1xi32>
    %13 = arith.cmpi ne, %11, %12 : vector<8x1xi32>
    %c0_i32_2 = arith.constant 0 : i32
    %14 = vector.broadcast %c0_i32_2 : i32 to vector<8x1xi32>
    %15 = arith.cmpi slt, %11, %14 : vector<8x1xi32>
    %c0_i32_3 = arith.constant 0 : i32
    %16 = arith.cmpi slt, %9, %c0_i32_3 : i32
    %17 = vector.broadcast %16 : i1 to vector<8x1xi1>
    %18 = vector.broadcast %17 : vector<8x1xi1> to vector<8x1xi1>
    %19 = arith.xori %15, %18 : vector<8x1xi1>
    %20 = arith.andi %19, %13 : vector<8x1xi1>
    %21 = vector.broadcast %9 : i32 to vector<8x1xi32>
    %22 = arith.addi %11, %21 : vector<8x1xi32>
    %23 = arith.select %20, %22, %11 : vector<8x1xi1>, vector<8x1xi32>
    %c0_i32_4 = arith.constant 0 : i32
    %24 = vector.broadcast %c0_i32_4 : i32 to vector<8x1xi32>
    %25 = arith.cmpi eq, %23, %24 : vector<8x1xi32>
    %26 = math.sin %7 : vector<8x1xf32>
    %27 = math.cos %7 : vector<8x1xf32>
    %28 = arith.select %25, %26, %27 : vector<8x1xi1>, vector<8x1xf32>
    %c4_i32 = arith.constant 4 : i32
    %29 = vector.broadcast %c4_i32 : i32 to vector<8x1xi32>
    %30 = arith.cmpi slt, %2, %29 : vector<8x1xi32>
    %cst = arith.constant 0.000000e+00 : f32
    %31 = vector.broadcast %cst : f32 to vector<8x1xf32>
    %32 = arith.select %30, %28, %31 : vector<8x1xi1>, vector<8x1xf32>
    %c0_5 = arith.constant 0 : index
    %c0_6 = arith.constant 0 : index
    %33 = vector.load %arg1[%c0_5, %c0_6] : memref<136x128xf32, #tpu.memory_space<vmem>>, vector<8x128xf32>
    %c8 = arith.constant 8 : index
    %c0_7 = arith.constant 0 : index
    %34 = vector.load %arg1[%c8, %c0_7] : memref<136x128xf32, #tpu.memory_space<vmem>>, vector<1x128xf32>
    %35 = vector.broadcast %32 : vector<8x1xf32> to vector<8x128xf32>
    %36 = arith.mulf %35, %33 : vector<8x128xf32>
    %cst_8 = arith.constant dense<0.000000e+00> : vector<128xf32>
    %37 = vector.multi_reduction <add>, %36, %cst_8 [0] : vector<8x128xf32> to vector<128xf32>
    %38 = vector.shape_cast %37 : vector<128xf32> to vector<1x128xf32>
    %39 = arith.addf %38, %34 : vector<1x128xf32>
    %40 = math.tanh %39 : vector<1x128xf32>
    %c16 = arith.constant 16 : index
    %c0_9 = arith.constant 0 : index
    %41 = vector.load %arg1[%c16, %c0_9] : memref<136x128xf32, #tpu.memory_space<vmem>>, vector<32x128xf32>
    %c48 = arith.constant 48 : index
    %c0_10 = arith.constant 0 : index
    %42 = vector.load %arg1[%c48, %c0_10] : memref<136x128xf32, #tpu.memory_space<vmem>>, vector<32x1xf32>
    %43 = vector.broadcast %40 : vector<1x128xf32> to vector<32x128xf32>
    %44 = arith.mulf %43, %41 : vector<32x128xf32>
    %cst_11 = arith.constant dense<0.000000e+00> : vector<32xf32>
    %45 = vector.multi_reduction <add>, %44, %cst_11 [1] : vector<32x128xf32> to vector<32xf32>
    %46 = vector.shape_cast %45 : vector<32xf32> to vector<32x1xf32>
    %47 = arith.addf %46, %42 : vector<32x1xf32>
    %48 = math.tanh %47 : vector<32x1xf32>
    %c80 = arith.constant 80 : index
    %c0_12 = arith.constant 0 : index
    %49 = vector.load %arg1[%c80, %c0_12] : memref<136x128xf32, #tpu.memory_space<vmem>>, vector<32x128xf32>
    %c112 = arith.constant 112 : index
    %c0_13 = arith.constant 0 : index
    %50 = vector.load %arg1[%c112, %c0_13] : memref<136x128xf32, #tpu.memory_space<vmem>>, vector<1x128xf32>
    %51 = vector.broadcast %48 : vector<32x1xf32> to vector<32x128xf32>
    %52 = arith.mulf %51, %49 : vector<32x128xf32>
    %cst_14 = arith.constant dense<0.000000e+00> : vector<128xf32>
    %53 = vector.multi_reduction <add>, %52, %cst_14 [0] : vector<32x128xf32> to vector<128xf32>
    %54 = vector.shape_cast %53 : vector<128xf32> to vector<1x128xf32>
    %55 = arith.addf %54, %50 : vector<1x128xf32>
    %56 = math.tanh %55 : vector<1x128xf32>
    %c120 = arith.constant 120 : index
    %c0_15 = arith.constant 0 : index
    %57 = vector.load %arg1[%c120, %c0_15] : memref<136x128xf32, #tpu.memory_space<vmem>>, vector<1x128xf32>
    %c128 = arith.constant 128 : index
    %c0_16 = arith.constant 0 : index
    %58 = vector.load %arg1[%c128, %c0_16] : memref<136x128xf32, #tpu.memory_space<vmem>>, vector<1x1xf32>
    %59 = arith.mulf %56, %57 : vector<1x128xf32>
    %cst_17 = arith.constant dense<0.000000e+00> : vector<1xf32>
    %60 = vector.multi_reduction <add>, %59, %cst_17 [1] : vector<1x128xf32> to vector<1xf32>
    %61 = vector.shape_cast %60 : vector<1xf32> to vector<1x1xf32>
    %62 = arith.addf %61, %58 : vector<1x1xf32>
    %c0_18 = arith.constant 0 : index
    %c0_19 = arith.constant 0 : index
    %63 = vector.load %arg2[%c0_18, %c0_19] : memref<1x1xf32, #tpu.memory_space<vmem>>, vector<1x1xf32>
    tpu.vector_store %arg2[%c0_18, %c0_19], %62 {strides = array<i32>} : memref<1x1xf32, #tpu.memory_space<vmem>>, vector<1x1xf32>,
    return
  }
}

</mosaic_0001>

<bundles_post_ra>
// kernel: forward.1
= control target key start
LH: loop header
LB: loop body
LE: loop exit
PB: predicated region body
PF: predicated region fallthrough
CT: control target
= control target key end

     0   :  { %7 = vsyncpa [#allocation5], 0  ;;  %s543_s0 = inlined_call_operand.vmem [shape: f32[2], index: 0, kind: input, shape index: {}]   ;;  %s544_s1 = inlined_call_operand.hbm [shape: f32[136,128], index: 1, kind: input, shape index: {}]   ;;  %s545_s2 = inlined_call_operand.hbm [shape: f32[1,1], index: 2, kind: output, shape index: {}]  }
   0x1   :  { %8 = vsyncpa [#allocation3], 0 }
   0x2   :  { %9 = vsyncpa [#allocation4], 0  ;;  %s16_s11 = sshll.u32 %s543_s0, 4  ;;  %s17_s11 = int_to_ptr.vmem [resolvable:$true] %s16_s11 }
   0x3   :  { %s422_s12 = scalar_lea.vmem %s17_s11, 16  ;;  %p427_p1 = scmp.lt.s32.totalorder %s17_s11, %s17_s11 }
   0x4   :  { %p423_p0 = scmp.ne.s32.totalorder %s17_s11, %s422_s12  ;;  %p428_p2 = scmp.lt.s32.totalorder %s422_s12, %s422_s12 }
   0x6   :  { %p429_p3 = por %p428_p2, %p427_p1 }
   0x8   :  { %p430_p4 = pnand %p429_p3, %p423_p0 }
   0xa   :  { %433 = shalt.err (!%p430_p4)
}
   0xb   :  { %s480_s13 = smov [#allocation2]   ;;  %s481_s14 = smov [#allocation6]  }
   0xc   :  { %19 = dma.vmem_to_smem %s17_s11, 16, %s480_s13, [#allocation5]  }
   0xd   :  { %s25_s15 = sshll.u32 %s481_s14, 4  ;;  %s26_s15 = int_to_ptr.vmem [resolvable:$true] %s25_s15 }
   0xe   :  { %s442_s16 = scalar_lea.vmem %s26_s15, 2176  ;;  %p447_p6 = scmp.lt.s32.totalorder %s26_s15, %s26_s15 }
   0xf   :  { %p443_p5 = scmp.ne.s32.totalorder %s26_s15, %s442_s16  ;;  %p448_p7 = scmp.lt.s32.totalorder %s442_s16, %s442_s16 }
  0x11   :  { %p449_p8 = por %p448_p7, %p447_p6 }
  0x13   :  { %p450_p9 = pnand %p449_p8, %p443_p5 }
  0x15   :  { %453 = shalt.err (!%p450_p9)
}
  0x16   :  { %s482_s0 = smov 128   ;;  %s483_s17 = smov 8  }
  0x17   :  { %31 = dma.hbm_to_vmem [thread:$0]  %s544_s1, 2176, %s26_s15, [#allocation3], %s482_s0, %s482_s0, %s483_s17  }
  0x18   :  { %474 = dma.done.wait [#allocation5], 16  }
  0x19   :  { %475 = vsyncadd [#allocation5], 4294967280 }
  0x1a   :  { %476 = dma.done.wait [#allocation3], 2176  }
  0x1b   :  { %477 = vsyncadd [#allocation3], 4294965120 }
  0x1c   :  { %38 = sfence }
  0x1d   :  { %s39_s20 = sld [smem:[#allocation2]]  ;;  %v41_v0 = vlaneseq  ;;  %v484_v16 = vmov 683565275   ;;  %v485_v18 = vmov 2475754826   ;;  %s491_s1 = smov [#allocation7]  }
  0x1e   :  { %s379_s21 = sld [smem:[#allocation2 + $0x1]]  ;;  %v486_v20 = vmov 2131351028   ;;  %v487_v22 = vmov 2102212464   ;;  %s369_s22 = sshll.u32 %s491_s1, 4  ;;  %s370_s22 = int_to_ptr.vmem [resolvable:$true] %s369_s22 }
  0x1f   :  { %v513_v1 = vshrl.u32 %v41_v0, 7  ;;  %v488_v24 = vmov 920167782   ;;  %v489_v31 = vmov 1326507024   ;;  %s454_s23 = scalar_lea.vmem %s370_s22, 16  ;;  %p459_p11 = scmp.lt.s32.totalorder %s370_s22, %s370_s22 }
  0x20   :  { %p455_p10 = scmp.ne.s32.totalorder %s370_s22, %s454_s23  ;;  %s458_s24 = scalar_lea.vmem %s370_s22, 32 }
  0x21   :  { %vm43_vm0 = vcmp.lt.s32.totalorder %v513_v1, 2  ;;  %p460_p12 = scmp.lt.s32.totalorder %s458_s24, %s454_s23 }
  0x23   :  { %v44_v2 = vstv %s39_s20  ;;  %p461_p13 = por %p460_p12, %p459_p11 }
  0x24   :  { %v45_v3 = vstv %s379_s21 }
  0x25   :  { %v516_v4 = vsel %vm43_vm0, %v44_v2, %v45_v3  ;;  %p462_p0 = pnand %p461_p13, %p455_p10 }
  0x26   :  { %v63_v5 = vand.u32 2139095040, %v516_v4  ;;  %v60_v7 = vand.u32 2147483647, %v516_v4  ;;  %vm62_vm8 = vcmp.lt.s32.totalorder %v516_v4, 0  ;;  %vm152_vm0 = vweird.f32 %v516_v4 }
  0x28   :  { %v64_v6 = vshrl.u32 %v63_v5, 23  ;;  %v67_v10 = vand.u32 8388607, %v60_v7  ;;  %vm61_vm9 = vcmp.le.f32.partialorder %v60_v7, 0.7853982 }
  0x2a   :  { %v380_v8 = vadd.s32 4294967169, %v64_v6  ;;  %v68_v13 = vor.u32 8388608, %v67_v10 }
  0x2c   :  { %v70_v9 = vadd.s32 1, %v380_v8  ;;  %v108_v33 = vshll.u32 %v68_v13, 8 }
  0x2e   :  { %vm71_vm1 = vcmp.gt.s32.totalorder %v70_v9, 0 }
  0x2f   :  { %v72_v11 = vsel %vm71_vm1, %v70_v9, 0 }
  0x30   :  { %v74_v12 = vand.u32 31, %v72_v11  ;;  %v73_v14 = vshrl.u32 %v72_v11, 5 }
  0x32   :  { %v75_v15 = vsub.s32 32, %v74_v12  ;;  %v77_v17 = vshll.u32 %v484_v16, %v74_v12  ;;  %v80_v19 = vshll.u32 %v485_v18, %v74_v12  ;;  %v83_v21 = vshll.u32 %v486_v20, %v74_v12 }
  0x33   :  { %v86_v23 = vshll.u32 %v487_v22, %v74_v12  ;;  %v89_v25 = vshll.u32 %v488_v24, %v74_v12  ;;  %vm92_vm2 = vcmp.lt.s32.totalorder %v73_v14, 1  ;;  %vm95_vm3 = vcmp.lt.s32.totalorder %v73_v14, 4 }
  0x34   :  { %v76_v26 = vshrl.u32 %v484_v16, %v75_v15  ;;  %v78_v27 = vshrl.u32 %v485_v18, %v75_v15  ;;  %v81_v28 = vshrl.u32 %v486_v20, %v75_v15  ;;  %v84_v29 = vshrl.u32 %v487_v22, %v75_v15 }
  0x35   :  { %v87_v30 = vshrl.u32 %v488_v24, %v75_v15  ;;  %v90_v32 = vshrl.u32 %v489_v31, %v75_v15  ;;  %vm93_vm4 = vcmp.lt.s32.totalorder %v73_v14, 2  ;;  %vm94_vm5 = vcmp.lt.s32.totalorder %v73_v14, 3 }
  0x36   :  { %v79_v34 = vor.u32 %v78_v27, %v77_v17  ;;  %v82_v35 = vor.u32 %v81_v28, %v80_v19  ;;  %v85_v36 = vor.u32 %v84_v29, %v83_v21  ;;  %v51_v29 = vand.u32 1, %v513_v1 }
  0x37   :  { %v88_v37 = vor.u32 %v87_v30, %v86_v23  ;;  %v91_v38 = vor.u32 %v90_v32, %v89_v25 }
  0x38   :  { %v96_v39 = vsel %vm92_vm2, %v76_v26, %v79_v34  ;;  %v97_v40 = vsel %vm95_vm3, %v85_v36, 2102212464  ;;  %v100_v41 = vsel %vm92_vm2, %v79_v34, %v82_v35  ;;  %v104_v42 = vsel %vm92_vm2, %v82_v35, %v85_v36 }
  0x39   :  { %v98_v43 = vsel %vm94_vm5, %v82_v35, %v97_v40  ;;  %v101_v44 = vsel %vm95_vm3, %v88_v37, 920167782  ;;  %v105_v45 = vsel %vm95_vm3, %v91_v38, 1326507024  ;;  %vm59_vm1 = vcmp.eq.s32.totalorder %v51_v29, 0  ;;  %v270_v40 = vld [vmem:[#allocation6] sm:$0xff] }
  0x3a   :  { %v102_v46 = vsel %vm94_vm5, %v85_v36, %v101_v44  ;;  %v106_v47 = vsel %vm94_vm5, %v88_v37, %v105_v45  ;;  %v99_v48 = vsel %vm93_vm4, %v96_v39, %v98_v43  ;;  %vm268_vm2 = vcmp.lt.s32.totalorder %v513_v1, 4 }
  0x3b   :  { %v103_v49 = vsel %vm93_vm4, %v100_v41, %v102_v46  ;;  %v107_v50 = vsel %vm93_vm4, %v104_v42, %v106_v47  ;;  %v115_v55 = vmul.u32 %v108_v33, %v99_v48  ;;  %v271_v48 = vld [vmem:[#allocation6 + $0x8] sm:$0x1]  ;;  %vm356_vm3 = vcmask 1040384  }
  0x3c   :  { %v522_v51 = vmul.u32.u64.low %v108_v33, %v107_v50  ;;  %v523_v52 = vmul.u32.u64.high %v108_v33, %v107_v50, %v522_v51  ;;  %v525_v53 = vmul.u32.u64.low %v108_v33, %v103_v49  ;;  %v526_v54 = vmul.u32.u64.high %v108_v33, %v103_v49, %v525_v53 }
  0x3d   :  { %v291_v51 = vsub.s32 0, %v513_v1  ;;  %vm361_vm4 = vcmask 0  }
  0x3e   :  { %vm117_vm6 = vc.u32 %v523_v52, %v525_v53  ;;  %v118_v56 = vadd.s32 1, %v526_v54  ;;  %v116_v5 = vadd.s32 %v525_v53, %v523_v52  ;;  %v281_v53 = vld [vmem:[#allocation6 + $0x10] sm:$0xff] }
  0x40   :  { %v119_v57 = vsel %vm117_vm6, %v118_v56, %v526_v54  ;;  %v283_v54 = vld [vmem:[#allocation6 + $0x20] sm:$0xff]  ;;  %v282_v56 = vld [vmem:[#allocation6 + $0x18] sm:$0xff] }
  0x41   :  { %v120_v58 = vadd.s32 %v119_v57, %v115_v55  ;;  %v284_v57 = vld [vmem:[#allocation6 + $0x28] sm:$0xff] }
  0x43   :  { %v121_v59 = vadd.s32 536870912, %v120_v58 }
  0x45   :  { %v122_v60 = vshrl.u32 %v121_v59, 30 }
  0x47   :  { %v123_v61 = vshll.u32 %v122_v60, 30  ;;  %v146_v19 = vsub.s32 4, %v122_v60 }
  0x49   :  { %v124_v62 = vsub.s32 %v120_v58, %v123_v61  ;;  %v147_v22 = vsel %vm62_vm8, %v146_v19, %v122_v60  ;;  %v313_v19 = vld [vmem:[#allocation6 + $0x50] sm:$0xff] }
  0x4a   :  { %v149_v24 = vsel %vm61_vm9, 0, %v147_v22 }
  0x4b   :  { %v126_v63 = vsub.s32 0, %v124_v62  ;;  %v153_v25 = vadd.s32 3, %v149_v24  ;;  %v257_v27 = vand.u32 3, %v149_v24 }
  0x4d   :  { %v381_v0 = vmin.u32 %v126_v63, %v124_v62  ;;  %v154_v26 = vand.u32 3, %v153_v25  ;;  %vm262_vm11 = vcmp.eq.s32.totalorder %v257_v27, 2  ;;  %vm259_vm13 = vcmp.eq.s32.totalorder %v257_v27, 0  ;;  %v285_v63 = vld [vmem:[#allocation6 + $0x30] sm:$0xff] }
  0x4e   :  { %vm258_vm15 = vcmp.lt.s32.totalorder %v257_v27, 2 }
  0x4f   :  { %v128_v2 = vclz %v381_v0  ;;  %vm159_vm10 = vcmp.eq.s32.totalorder %v154_v26, 2  ;;  %vm156_vm12 = vcmp.eq.s32.totalorder %v154_v26, 0  ;;  %vm155_vm14 = vcmp.lt.s32.totalorder %v154_v26, 2  ;;  %v316_v26 = vld [vmem:[#allocation6 + $0x68] sm:$0xff] }
  0x51   :  { %v382_v3 = vadd.s32 4294967294, %v128_v2 }
  0x53   :  { %vm383_vm7 = vcmp.lt.s32.totalorder %v382_v3, 0 }
  0x54   :  { %v131_v6 = vsel %vm383_vm7, 0, %v382_v3  ;;  %v286_v3 = vld [vmem:[#allocation6 + $0x38] sm:$0xff] }
  0x55   :  { %v132_v8 = vsub.s32 32, %v131_v6  ;;  %v133_v9 = vshll.u32 %v124_v62, %v131_v6  ;;  %v136_v10 = vsub.s32 4294967266, %v131_v6  ;;  %v490_v62 = vmov 0  }
  0x56   :  { %404 = vset.pattern.permute.xlu0 %v490_v62  ;;  %405 = vset.pattern.permute.xlu1 %v490_v62 }
  0x57   :  { %v134_v11 = vshrl.u32 %v116_v5, %v132_v8  ;;  %v137_v12 = vadd.s32 127, %v136_v10  ;;  %v287_v5 = vld [vmem:[#allocation6 + $0x40] sm:$0xff]  ;;  %v288_v10 = vld [vmem:[#allocation6 + $0x48] sm:$0xff] }
  0x59   :  { %v135_v13 = vor.u32 %v134_v11, %v133_v9  ;;  %v138_v14 = vshll.u32 %v137_v12, 23 }
  0x5b   :  { %v139_v15 = vor.u32 4788187, %v138_v14  ;;  %v142_v16 = vcvt.s32.f32 %v135_v13 }
  0x5d   :  { %v140_v17 = vand.u32 2147483647, %v139_v15 }
  0x5f   :  { %v143_v18 = vmul.f32 %v142_v16, %v140_v17  ;;  %v314_v17 = vld [vmem:[#allocation6 + $0x58] sm:$0xff] }
  0x61   :  { %v144_v20 = vxor.u32 2147483648, %v143_v18 }
  0x63   :  { %v145_v21 = vsel %vm62_vm8, %v144_v20, %v143_v18 }
  0x64   :  { %v148_v23 = vsel %vm61_vm9, %v516_v4, %v145_v21  ;;  %v315_v21 = vld [vmem:[#allocation6 + $0x60] sm:$0xff] }
  0x65   :  { %406 = vcosq.f32 %v148_v23 }
  0x66   :  { %408 = vsinq.f32 %v148_v23 }
  0x72   :  { %v407_v28 = vpop.eup %406 }
  0x73   :  { %v409_v30 = vpop.eup %408  ;;  %v160_v31 = vxor.u32 2147483648, %v407_v28 }
  0x74   :  { %v157_v7 = vxor.u32 2147483648, %v409_v30 }
  0x75   :  { %v161_v32 = vsel %vm159_vm10, %v160_v31, %v409_v30  ;;  %v264_v33 = vsel %vm262_vm11, %v160_v31, %v409_v30 }
  0x76   :  { %v158_v34 = vsel %vm156_vm12, %v407_v28, %v157_v7  ;;  %v261_v35 = vsel %vm259_vm13, %v407_v28, %v157_v7 }
  0x77   :  { %v162_v36 = vsel %vm155_vm14, %v158_v34, %v161_v32  ;;  %v265_v37 = vsel %vm258_vm15, %v261_v35, %v264_v33 }
  0x78   :  { %v163_v38 = vsel %vm152_vm0, nan, %v162_v36  ;;  %v266_v39 = vsel %vm152_vm0, nan, %v265_v37  ;;  %v317_v36 = vld [vmem:[#allocation6 + $0x70] sm:$0x1] }
  0x79   :  { %v267_v41 = vsel %vm59_vm1, %v163_v38, %v266_v39  ;;  %v353_v39 = vld [vmem:[#allocation6 + $0x78] sm:$0x1] }
  0x7a   :  { %v269_v42 = vsel %vm268_vm2, %v267_v41, 0.0 }
  0x7b   :  { %v272_v43 = vmul.f32 %v270_v40, %v269_v42 }
  0x7d   :  { %v273_v44 = vrot.slane %v272_v43, 4 }
  0x7f   :  { %v274_v45 = vadd.f32 %v273_v44, %v272_v43  ;;  %v354_v43 = vld [vmem:[#allocation6 + $0x80] sm:$0x1] }
  0x81   :  { %v275_v46 = vrot.slane %v274_v45, 2 }
  0x83   :  { %v276_v47 = vadd.f32 %v275_v46, %v274_v45 }
  0x85   :  { %v277_v4 = vrot.slane %v276_v47, 1 }
  0x87   :  { %v278_v49 = vadd.f32 %v277_v4, %v276_v47 }
  0x89   :  { %v279_v50 = vadd.f32 %v278_v49, %v271_v48 }
  0x8b   :  { %410 = vtanh.f32 %v279_v50 }
  0x98   :  { %v411_v52 = vpop.eup %410 }
  0x99   :  { %v292_v55 = vrot.slane %v411_v52, %v291_v51 }
  0x9b   :  { %v293_v58 = vmul.f32 %v292_v55, %v281_v53  ;;  %v295_v59 = vmul.f32 %v292_v55, %v283_v54  ;;  %v294_v60 = vmul.f32 %v292_v55, %v282_v56  ;;  %v296_v61 = vmul.f32 %v292_v55, %v284_v57 }
  0x9d   :  { %297 = vadd.xlane.f32.xlu0 %v293_v58  ;;  %301 = vadd.xlane.f32.xlu1 %v295_v59 }
  0xa1   :  { %299 = vadd.xlane.f32.xlu0 %v294_v60  ;;  %303 = vadd.xlane.f32.xlu1 %v296_v61 }
 0x126   :  { %v298_v0 = vpop.xlane.xlu0 %297  ;;  %v302_v1 = vpop.xlane.xlu1 %301 }
 0x127   :  { %v305_v2 = vadd.f32 %v298_v0, %v285_v63  ;;  %v307_v9 = vadd.f32 %v302_v1, %v287_v5 }
 0x129   :  { %412 = vtanh.f32 %v305_v2 }
 0x12a   :  { %v300_v6 = vpop.xlane.xlu0 %299  ;;  %v304_v11 = vpop.xlane.xlu1 %303 }
 0x12b   :  { %v306_v8 = vadd.f32 %v300_v6, %v286_v3  ;;  %v308_v12 = vadd.f32 %v304_v11, %v288_v10 }
 0x12d   :  { %414 = vtanh.f32 %v306_v8 }
 0x12e   :  { %416 = vtanh.f32 %v307_v9 }
 0x12f   :  { %418 = vtanh.f32 %v308_v12 }
 0x136   :  { %v413_v13 = vpop.eup %412 }
 0x137   :  { %320 = vperm.xlu0 %404, %v413_v13  }
 0x13a   :  { %v415_v14 = vpop.eup %414 }
 0x13b   :  { %325 = vperm.xlu1 %405, %v415_v14   ;;  %v417_v15 = vpop.eup %416 }
 0x13c   :  { %v419_v16 = vpop.eup %418 }
 0x13f   :  { %330 = vperm.xlu1 %405, %v417_v15  }
 0x143   :  { %335 = vperm.xlu1 %405, %v419_v16  }
 0x1b2   :  { %v321_v20 = vpop.permute.xlu0 %320 }
 0x1b3   :  { %v338_v24 = vmul.f32 %v321_v20, %v313_v19 }
 0x1b6   :  { %v326_v18 = vpop.permute.xlu1 %325 }
 0x1b7   :  { %v339_v22 = vmul.f32 %v326_v18, %v314_v17 }
 0x1b9   :  { %v342_v27 = vadd.f32 %v339_v22, %v338_v24 }
 0x1ba   :  { %v331_v23 = vpop.permute.xlu1 %330 }
 0x1bb   :  { %v340_v25 = vmul.f32 %v331_v23, %v315_v21 }
 0x1bd   :  { %v343_v29 = vadd.f32 %v342_v27, %v340_v25 }
 0x1be   :  { %v336_v28 = vpop.permute.xlu1 %335 }
 0x1bf   :  { %v341_v30 = vmul.f32 %v336_v28, %v316_v26 }
 0x1c1   :  { %v344_v31 = vadd.f32 %v343_v29, %v341_v30 }
 0x1c3   :  { %v345_v7 = vrot.slane %v344_v31, 4 }
 0x1c5   :  { %v346_v32 = vadd.f32 %v345_v7, %v344_v31 }
 0x1c7   :  { %v347_v33 = vrot.slane %v346_v32, 2 }
 0x1c9   :  { %v348_v34 = vadd.f32 %v347_v33, %v346_v32 }
 0x1cb   :  { %v349_v35 = vrot.slane %v348_v34, 1 }
 0x1cd   :  { %v350_v37 = vadd.f32 %v349_v35, %v348_v34 }
 0x1cf   :  { %v351_v38 = vadd.f32 %v350_v37, %v317_v36 }
 0x1d1   :  { %420 = vtanh.f32 %v351_v38 }
 0x1de   :  { %v421_v40 = vpop.eup %420 }
 0x1df   :  { %v355_v41 = vmul.f32 %v421_v40, %v353_v39 }
 0x1e1   :  { %v357_v42 = vsel %vm356_vm3, %v355_v41, 0.0 }
 0x1e2   :  { %358 = vadd.xlane.f32.xlu1 %v357_v42 }
 0x26b   :  { %v359_v44 = vpop.xlane.xlu1 %358 }
 0x26c   :  { %v360_v45 = vadd.f32 %v359_v44, %v354_v43 }
 0x26e   :  { %362 = vst.msk [vmem:[#allocation7] sm:$0x1] %vm361_vm4, %v360_v45 }
 0x26f   :  { %465 = shalt.err (!%p462_p0)
}
 0x270   :  { %372 = dma.vmem_to_hbm [thread:$0]  %s370_s22, 16, %s545_s2, [#allocation4]  }
 0x271   :  { %478 = dma.done.wait [#allocation4], 16  }
 0x272   :  { %479 = vsyncadd [#allocation4], 4294967280 }
 0x273   :  { %376 = vsyncpa [#allocation3], 1 }
 0x274   :  { %377 = vsyncpa [#allocation4], 1 }
 0x275   :  { %378 = vsyncpa [#allocation5], 1 }

</bundles_post_ra>
